<compile_context>
chip_gen: v6e
topology: v6e:2x2x1
jax: 0.10.0
libtpu: 0.0.40
codegen_flags: <defaults>
</compile_context>

<pallas_src>
import functools

import jax
import jax.numpy as jnp
from jax.experimental import pallas as pl
from jax.experimental.pallas import tpu as pltpu


def _round_up(x: int, m: int) -> int:
    return ((x + m - 1) // m) * m


def _head_kernel(x_ref, w1f_ref, b1f_ref, w2_ref, b2_ref, o_ref,
                 *, apply_sigmoid: bool):
    # x_ref  : (TB, Cp)        f32   pooled features, C zero-padded to Cp
    # w1f_ref: (Cp, HID)       bf16  folded (backbone-proj @ fc1) weight
    # b1f_ref: (1, HID)        f32   folded bias
    # w2_ref : (HID, Lpad)     bf16  fc2 weight, lane-padded to Lpad
    # b2_ref : (1, Lpad)       f32
    # o_ref  : (TB, Lpad)      bf16  lane-dense padded output slab

    # ---- folded projection + fc1 -> ReLU (bf16 MXU, f32 accumulate) --------
    h = jnp.dot(x_ref[...].astype(jnp.bfloat16), w1f_ref[...],
                preferred_element_type=jnp.float32) + b1f_ref[...]   # (TB, HID)
    h = jnp.maximum(h, 0.0)

    # ---- dropout(p=0.5): eval-mode identity ---------------------------------
    # TODO(synk): training-mode dropout would need pltpu.prng_seed /
    # prng_random_bits and a seed input; inference path is identity.

    # ---- fc2 into lane-dense padded slab -------------------------------------
    logits = jnp.dot(h.astype(jnp.bfloat16), w2_ref[...],
                     preferred_element_type=jnp.float32) + b2_ref[...]  # (TB, Lpad)

    if apply_sigmoid:
        logits = jax.nn.sigmoid(logits)
    o_ref[...] = logits.astype(o_ref.dtype)


def _batch_tile(B: int) -> int:
    """Pick the batch tile: >=2 grid steps when B >= 16; cap per MXU width."""
    cap = 256
    try:
        kind = jax.devices()[0].device_kind.lower()
        if "v5 lite" in kind or "v5e" in kind or "v5litepod" in kind:
            cap = 128   # v5e MXU is 128-wide in M; 128 already saturates a pass
    except Exception:
        pass
    if B <= 8:
        return 8
    return min(cap, max(8, _round_up(pl.cdiv(B, 2), 8)))


def custom_model_forward(x_nchw, params, *, label_numbers: int):
    """x_nchw: (B, C, H, W) float32 -> (B, label_numbers) float32."""
    B, C, H, W = x_nchw.shape

    # ---- backbone stand-in, stage 1: global average pool (plain JAX) --------
    # Keeps the (B, C, H, W) image tensor out of the Pallas kernel; only the
    # pooled (B, C) features are DMA'd.
    pooled = jnp.mean(x_nchw.astype(jnp.float32), axis=(2, 3))        # (B, C)

    wf = params["wf"]            # (C, F)    synthetic backbone projection
    bf = params["bf"]            # (1, F)
    w1 = params["w1"]            # (F, HID)  fc1
    b1 = params["b1"]            # (1, HID)
    w2 = params["w2"]            # (HID, L)  fc2
    b2 = params["b2"]            # (1, L)

    HID = w1.shape[1]
    L = label_numbers

    # ---- constant-fold backbone projection into fc1 (in f32, cast once) -----
    # pooled @ wf + bf  then  @ w1 + b1   ==   pooled @ (wf@w1) + (bf@w1 + b1)
    w1f = (wf.astype(jnp.float32) @ w1.astype(jnp.float32))           # (C, HID)
    b1f = (bf.astype(jnp.float32) @ w1.astype(jnp.float32)
           + b1.astype(jnp.float32))                                  # (1, HID)

    # Zero-pad contraction dim C to a sublane multiple -> one clean MXU dot.
    C_pad = max(8, _round_up(C, 8))
    if C_pad != C:
        pooled = jnp.pad(pooled, ((0, 0), (0, C_pad - C)))
        w1f = jnp.pad(w1f, ((0, C_pad - C), (0, 0)))

    # Lane-dense output: pad fc2 output width to a multiple of 128.
    L_pad = max(128, _round_up(L, 128))
    w2_p = jnp.zeros((HID, L_pad), jnp.float32).at[:, :L].set(
        w2.astype(jnp.float32))
    b2_p = jnp.zeros((1, L_pad), jnp.float32).at[:, :L].set(
        b2.astype(jnp.float32))

    # Batch tiling (>=2 grid steps when B >= 16 so both v7x TCs get work).
    TB = _batch_tile(B)
    B_pad = _round_up(B, TB)
    if B_pad != B:
        pooled = jnp.pad(pooled, ((0, B_pad - B), (0, 0)))

    # bf16 MXU weights (single cast after f32 folding); biases stay f32.
    w1f_b = w1f.astype(jnp.bfloat16)
    w2_b = w2_p.astype(jnp.bfloat16)

    kernel = functools.partial(_head_kernel,
                               apply_sigmoid=(label_numbers == 1))

    resident = lambda shape: pl.BlockSpec(shape, lambda i: (0,) * len(shape))

    out_padded = pl.pallas_call(
        kernel,
        out_shape=jax.ShapeDtypeStruct((B_pad, L_pad), jnp.bfloat16),
        grid_spec=pltpu.PrefetchScalarGridSpec(
            num_scalar_prefetch=0,
            grid=(B_pad // TB,),
            in_specs=[
                pl.BlockSpec((TB, C_pad), lambda i: (i, 0)),  # pooled features
                resident((C_pad, HID)),                       # folded W1f (bf16)
                resident((1, HID)),                           # folded b1f
                resident((HID, L_pad)),                       # w2 (bf16, padded)
                resident((1, L_pad)),                         # b2 (padded)
            ],
            out_specs=pl.BlockSpec((TB, L_pad), lambda i: (i, 0)),
        ),
        compiler_params=pltpu.CompilerParams(
            dimension_semantics=("parallel",),
            vmem_limit_bytes=8 * 1024 * 1024,   # actual need is ~1 MB
        ),
    )(pooled, w1f_b, b1f, w2_b, b2_p)

    return out_padded[:B, :L].astype(jnp.float32)


def init_params(key, *, in_channels=4, in_features_dim=512, hidden=512,
                label_numbers=1):
    k0, k1, k2 = jax.random.split(key, 3)
    wf = jax.random.normal(k0, (in_channels, in_features_dim),
                           jnp.float32) * (1.0 / jnp.sqrt(in_channels))
    bf = jnp.zeros((1, in_features_dim), jnp.float32)
    w1 = jax.random.normal(k1, (in_features_dim, hidden),
                           jnp.float32) * (1.0 / jnp.sqrt(in_features_dim))
    b1 = jnp.zeros((1, hidden), jnp.float32)
    w2 = jax.random.normal(k2, (hidden, label_numbers),
                           jnp.float32) * (1.0 / jnp.sqrt(hidden))
    b2 = jnp.zeros((1, label_numbers), jnp.float32)
    return dict(wf=wf, bf=bf, w1=w1, b1=b1, w2=w2, b2=b2)


if __name__ == "__main__":
    label_numbers = 1            # exercises the torch.sigmoid branch
    B, C, H, W = 2, 4, 16, 16

    key = jax.random.PRNGKey(0)
    kx, kp = jax.random.split(key)
    x = jax.random.normal(kx, (B, C, H, W), jnp.float32)
    params = init_params(kp, in_channels=C, label_numbers=label_numbers)

    fwd = jax.jit(functools.partial(custom_model_forward,
                                    label_numbers=label_numbers))
    out = fwd(x, params)
    jax.block_until_ready(out)

    assert out.shape == (B, label_numbers)
    assert bool(jnp.all((out >= 0.0) & (out <= 1.0)))  # sigmoid output range
    assert bool(jnp.all(jnp.isfinite(out)))
    print("KERNEL_OK")
</pallas_src>

<mosaic_0001>
module attributes {stable_mosaic.version = 11 : i64} {
  func.func @_head_kernel(%arg0: i32, %arg1: memref<8x8xf32, #tpu.memory_space<vmem>>, %arg2: memref<8x512xbf16, #tpu.memory_space<vmem>>, %arg3: memref<1x512xf32, #tpu.memory_space<vmem>>, %arg4: memref<512x128xbf16, #tpu.memory_space<vmem>>, %arg5: memref<1x128xf32, #tpu.memory_space<vmem>>, %arg6: memref<8x128xbf16, #tpu.memory_space<vmem>>) attributes {dimension_semantics = [#tpu.dimension_semantics<parallel>], iteration_bounds = array<i64: 1>, scalar_prefetch = 0 : i64, scratch_operands = 0 : i64, tpu.core_type = #tpu.core_type<tc>, window_params = [{transform_indices = @transform_0, window_bounds = array<i64: 8, 8>}, {pipeline_mode = #tpu.pipeline_mode<synchronous>, transform_indices = @transform_1, window_bounds = array<i64: 8, 512>}, {pipeline_mode = #tpu.pipeline_mode<synchronous>, transform_indices = @transform_2, window_bounds = array<i64: 1, 512>}, {pipeline_mode = #tpu.pipeline_mode<synchronous>, transform_indices = @transform_3, window_bounds = array<i64: 512, 128>}, {pipeline_mode = #tpu.pipeline_mode<synchronous>, transform_indices = @transform_4, window_bounds = array<i64: 1, 128>}, {transform_indices = @transform_5, window_bounds = array<i64: 8, 128>}]} {
    %c0 = arith.constant 0 : index
    %c0_0 = arith.constant 0 : index
    %0 = vector.load %arg1[%c0, %c0_0] : memref<8x8xf32, #tpu.memory_space<vmem>>, vector<8x8xf32>
    %1 = arith.truncf %0 : vector<8x8xf32> to vector<8x8xbf16>
    %c0_1 = arith.constant 0 : index
    %c0_2 = arith.constant 0 : index
    %2 = vector.load %arg2[%c0_1, %c0_2] : memref<8x512xbf16, #tpu.memory_space<vmem>>, vector<8x512xbf16>
    %cst = arith.constant dense<0.000000e+00> : vector<8x512xf32>
    %3 = tpu.matmul %1, %2, %cst {dimension_numbers = #tpu.dot_dimension_numbers<[1], [0], [0], [1], [0, 0, 1, 1], [], []>} : vector<8x8xbf16>, vector<8x512xbf16>, vector<8x512xf32> -> vector<8x512xf32>
    %c0_3 = arith.constant 0 : index
    %c0_4 = arith.constant 0 : index
    %4 = vector.load %arg3[%c0_3, %c0_4] : memref<1x512xf32, #tpu.memory_space<vmem>>, vector<1x512xf32>
    %5 = vector.broadcast %4 : vector<1x512xf32> to vector<8x512xf32>
    %6 = arith.addf %3, %5 : vector<8x512xf32>
    %cst_5 = arith.constant 0.000000e+00 : f32
    %7 = vector.broadcast %cst_5 : f32 to vector<8x512xf32>
    %8 = arith.maximumf %6, %7 : vector<8x512xf32>
    %9 = arith.truncf %8 : vector<8x512xf32> to vector<8x512xbf16>
    %c0_6 = arith.constant 0 : index
    %c0_7 = arith.constant 0 : index
    %10 = vector.load %arg4[%c0_6, %c0_7] : memref<512x128xbf16, #tpu.memory_space<vmem>>, vector<512x128xbf16>
    %cst_8 = arith.constant dense<0.000000e+00> : vector<8x128xf32>
    %11 = tpu.matmul %9, %10, %cst_8 {dimension_numbers = #tpu.dot_dimension_numbers<[1], [0], [0], [1], [0, 0, 1, 1], [], []>} : vector<8x512xbf16>, vector<512x128xbf16>, vector<8x128xf32> -> vector<8x128xf32>
    %c0_9 = arith.constant 0 : index
    %c0_10 = arith.constant 0 : index
    %12 = vector.load %arg5[%c0_9, %c0_10] : memref<1x128xf32, #tpu.memory_space<vmem>>, vector<1x128xf32>
    %13 = vector.broadcast %12 : vector<1x128xf32> to vector<8x128xf32>
    %14 = arith.addf %11, %13 : vector<8x128xf32>
    %15 = arith.negf %14 : vector<8x128xf32>
    %16 = math.exp %15 : vector<8x128xf32>
    %cst_11 = arith.constant 1.000000e+00 : f32
    %17 = vector.broadcast %cst_11 : f32 to vector<8x128xf32>
    %18 = arith.addf %17, %16 : vector<8x128xf32>
    %19 = arith.divf %17, %18 : vector<8x128xf32>
    %20 = arith.truncf %19 : vector<8x128xf32> to vector<8x128xbf16>
    %c0_12 = arith.constant 0 : index
    %c0_13 = arith.constant 0 : index
    %21 = vector.load %arg6[%c0_12, %c0_13] : memref<8x128xbf16, #tpu.memory_space<vmem>>, vector<8x128xbf16>
    tpu.vector_store %arg6[%c0_12, %c0_13], %20 {strides = array<i32>} : memref<8x128xbf16, #tpu.memory_space<vmem>>, vector<8x128xbf16>,
    return
  }
  func.func @transform_0(%arg0: i32) -> (i32, i32) {
    %c0_i32 = arith.constant 0 : i32
    %c0_i32_0 = arith.constant 0 : i32
    return %arg0, %c0_i32 : i32, i32
  }
  func.func @transform_1(%arg0: i32) -> (i32, i32) {
    %c0_i32 = arith.constant 0 : i32
    %c0_i32_0 = arith.constant 0 : i32
    %c0_i32_1 = arith.constant 0 : i32
    return %c0_i32, %c0_i32_0 : i32, i32
  }
  func.func @transform_2(%arg0: i32) -> (i32, i32) {
    %c0_i32 = arith.constant 0 : i32
    %c0_i32_0 = arith.constant 0 : i32
    %c0_i32_1 = arith.constant 0 : i32
    return %c0_i32, %c0_i32_0 : i32, i32
  }
  func.func @transform_3(%arg0: i32) -> (i32, i32) {
    %c0_i32 = arith.constant 0 : i32
    %c0_i32_0 = arith.constant 0 : i32
    %c0_i32_1 = arith.constant 0 : i32
    return %c0_i32, %c0_i32_0 : i32, i32
  }
  func.func @transform_4(%arg0: i32) -> (i32, i32) {
    %c0_i32 = arith.constant 0 : i32
    %c0_i32_0 = arith.constant 0 : i32
    %c0_i32_1 = arith.constant 0 : i32
    return %c0_i32, %c0_i32_0 : i32, i32
  }
  func.func @transform_5(%arg0: i32) -> (i32, i32) {
    %c0_i32 = arith.constant 0 : i32
    %c0_i32_0 = arith.constant 0 : i32
    return %arg0, %c0_i32 : i32, i32
  }
}

</mosaic_0001>

<bundles_post_ra>
// kernel: custom_model_forward.1
= control target key start
LH: loop header
LB: loop body
LE: loop exit
PB: predicated region body
PF: predicated region fallthrough
CT: control target
= control target key end

     0   :  { %vm61_vm0 = vcmask 1043456   ;;  %v646_v2 = vmov 0   ;;  %vm57_vm1 = vcmask 64512   ;;  %v27_v43 = vlaneseq  ;;  %s791_s1 = inlined_call_operand.vmem [shape: bf16[8,512], index: 1, kind: input, shape index: {}]   ;;  %s792_s0 = inlined_call_operand.vmem [shape: f32[8,8], index: 0, kind: input, shape index: {}]   ;;  %s793_s3 = inlined_call_operand.vmem [shape: bf16[512,128], index: 3, kind: input, shape index: {}]   ;;  %s794_s2 = inlined_call_operand.vmem [shape: f32[1,512], index: 2, kind: input, shape index: {}]   ;;  %s795_s4 = inlined_call_operand.vmem [shape: f32[1,128], index: 4, kind: input, shape index: {}]   ;;  %s796_s5 = inlined_call_operand.vmem [shape: bf16[8,128], index: 5, kind: output, shape index: {}]  }
   0x1   :  { %v23_v0 = vld [vmem:[%s791_s1] sm:$0xff]  ;;  %v24_v1 = vld [vmem:[%s791_s1 + $0x8] sm:$0xff]  ;;  %106 = vmatprep.mubr.bf16.mxu0 %v646_v2  ;;  %147 = vmatprep.mubr.bf16.mxu1 %v646_v2  ;;  %v610_v8 = vld [vmem:[%s793_s3 + $0x78] sm:$0xff]  }
   0x2   :  { %v21_v3 = vld [vmem:[%s792_s0] sm:$0xff]  ;;  %v520_v4 = vcombine.high %v23_v0, %v23_v0  ;;  %v522_v5 = vcombine.high %v24_v1, %v24_v1  ;;  %v519_v6 = vcombine.low %v23_v0, %v23_v0  ;;  %v521_v7 = vcombine.low %v24_v1, %v24_v1  ;;  %v611_v9 = vld [vmem:[%s793_s3 + $0xf8] sm:$0xff]   ;;  %v614_v15 = vld [vmem:[%s793_s3 + $0x70] sm:$0xff]  }
   0x3   :  { %v22_v12 = vpack.c.bf16 %v21_v3, %v21_v3  ;;  %v612_v13 = vld [vmem:[%s793_s3 + $0x38] sm:$0xff]   ;;  %v615_v16 = vld [vmem:[%s793_s3 + $0xf0] sm:$0xff]   ;;  %v618_v19 = vld [vmem:[%s793_s3 + $0x68] sm:$0xff]   ;;  %v28_v44 = vshrl.u32 %v27_v43, 7 }
   0x4   :  { %523 = vmatprep.subr.msk.bf16.mxu0 %vm61_vm0, %v520_v4  ;;  %525 = vmatprep.subr.msk.bf16.mxu1 %vm61_vm0, %v522_v5  ;;  %v63_v10 = vsel %vm61_vm0, %v519_v6, 0  ;;  %v69_v11 = vsel %vm61_vm0, %v521_v7, 0  ;;  %v613_v14 = vld [vmem:[%s793_s3 + $0xb8] sm:$0xff]   ;;  %v616_v17 = vld [vmem:[%s793_s3 + $0x30] sm:$0xff]   ;;  %v619_v20 = vld [vmem:[%s793_s3 + $0xe8] sm:$0xff]  }
   0x5   :  { %89 = vmatpush1.bf16.msra.mxu0 %v63_v10  ;;  %130 = vmatpush1.bf16.msra.mxu1 %v69_v11  ;;  %v617_v18 = vld [vmem:[%s793_s3 + $0xb0] sm:$0xff]   ;;  %v620_v21 = vld [vmem:[%s793_s3 + $0x28] sm:$0xff]   ;;  %v622_v23 = vld [vmem:[%s793_s3 + $0x60] sm:$0xff]   ;;  %v29_v45 = vsub.s32 0, %v28_v44  ;;  %v37_v46 = vsub.s32 2, %v28_v44  ;;  %v33_v48 = vsub.s32 1, %v28_v44 }
   0x6   :  { %561 = vmatprep.subr.bf16.mxu0 %v610_v8  ;;  %583 = vmatprep.subr.bf16.mxu1 %v611_v9  ;;  %v621_v22 = vld [vmem:[%s793_s3 + $0xa8] sm:$0xff]   ;;  %v623_v24 = vld [vmem:[%s793_s3 + $0xe0] sm:$0xff]   ;;  %v626_v27 = vld [vmem:[%s793_s3 + $0x58] sm:$0xff]   ;;  %v41_v49 = vsub.s32 3, %v28_v44 }
   0x7   :  { %v624_v25 = vld [vmem:[%s793_s3 + $0x20] sm:$0xff]   ;;  %v627_v28 = vld [vmem:[%s793_s3 + $0xd8] sm:$0xff]   ;;  %v630_v31 = vld [vmem:[%s793_s3 + $0x50] sm:$0xff]  }
   0x8   :  { %524 = vmatmul.mubr.msk.bf16.vlgmr.msra.gmra.mxu0 %vm57_vm1, %v22_v12  ;;  %526 = vmatmul.mubr.msk.bf16.vlgmr.msra.gmra.mxu1 %vm57_vm1, %v22_v12  ;;  %v625_v26 = vld [vmem:[%s793_s3 + $0xa0] sm:$0xff]   ;;  %v628_v29 = vld [vmem:[%s793_s3 + $0x18] sm:$0xff]   ;;  %v631_v32 = vld [vmem:[%s793_s3 + $0xd0] sm:$0xff]  }
   0x9   :  { %562 = vmatpush3.bf16.msra.mxu0 %v612_v13  ;;  %584 = vmatpush3.bf16.msra.mxu1 %v613_v14  ;;  %v629_v30 = vld [vmem:[%s793_s3 + $0x98] sm:$0xff]   ;;  %v632_v33 = vld [vmem:[%s793_s3 + $0x10] sm:$0xff]   ;;  %v634_v35 = vld [vmem:[%s793_s3 + $0x48] sm:$0xff]  }
   0xa   :  { %563 = vmatprep.subr.bf16.mxu0 %v614_v15  ;;  %585 = vmatprep.subr.bf16.mxu1 %v615_v16  ;;  %v633_v34 = vld [vmem:[%s793_s3 + $0x90] sm:$0xff]   ;;  %v635_v36 = vld [vmem:[%s793_s3 + $0xc8] sm:$0xff]   ;;  %v638_v39 = vld [vmem:[%s793_s3 + $0x40] sm:$0xff]  }
   0xb   :  { %v636_v37 = vld [vmem:[%s793_s3 + $0x8] sm:$0xff]   ;;  %v639_v40 = vld [vmem:[%s793_s3 + $0xc0] sm:$0xff]  }
   0xc   :  { %v637_v38 = vld [vmem:[%s793_s3 + $0x88] sm:$0xff]   ;;  %v640_v41 = vld [vmem:[%s793_s3] sm:$0xff]  }
   0xd   :  { %564 = vmatpush3.bf16.msra.mxu0 %v616_v17  ;;  %586 = vmatpush3.bf16.msra.mxu1 %v617_v18  ;;  %v641_v42 = vld [vmem:[%s793_s3 + $0x80] sm:$0xff]  }
   0xe   :  { %565 = vmatprep.subr.bf16.mxu0 %v618_v19  ;;  %587 = vmatprep.subr.bf16.mxu1 %v619_v20  ;;  %v25_v47 = vld [vmem:[%s794_s2] sm:$0xf] }
   0xf   :  { %v30_v50 = vrot.slane %v25_v47, %v29_v45  ;;  %v38_v51 = vrot.slane %v25_v47, %v37_v46  ;;  %v34_v52 = vrot.slane %v25_v47, %v33_v48  ;;  %v42_v53 = vrot.slane %v25_v47, %v41_v49  ;;  %v527_v12 = vld [vmem:[%s795_s4] ss:$0 sm:$0xff] }
  0x11   :  { %566 = vmatpush3.bf16.msra.mxu0 %v620_v21  ;;  %588 = vmatpush3.bf16.msra.mxu1 %v621_v22 }
  0x12   :  { %567 = vmatprep.subr.bf16.mxu0 %v622_v23  ;;  %589 = vmatprep.subr.bf16.mxu1 %v623_v24 }
  0x15   :  { %568 = vmatpush3.bf16.msra.mxu0 %v624_v25  ;;  %590 = vmatpush3.bf16.msra.mxu1 %v625_v26 }
  0x16   :  { %569 = vmatprep.subr.bf16.mxu0 %v626_v27  ;;  %591 = vmatprep.subr.bf16.mxu1 %v627_v28 }
  0x19   :  { %570 = vmatpush3.bf16.msra.mxu0 %v628_v29  ;;  %592 = vmatpush3.bf16.msra.mxu1 %v629_v30 }
  0x1a   :  { %571 = vmatprep.subr.bf16.mxu0 %v630_v31  ;;  %593 = vmatprep.subr.bf16.mxu1 %v631_v32 }
  0x1d   :  { %572 = vmatpush3.bf16.msra.mxu0 %v632_v33  ;;  %594 = vmatpush3.bf16.msra.mxu1 %v633_v34 }
  0x1e   :  { %573 = vmatprep.subr.bf16.mxu0 %v634_v35  ;;  %595 = vmatprep.subr.bf16.mxu1 %v635_v36 }
  0x21   :  { %574 = vmatpush3.bf16.msra.mxu0 %v636_v37  ;;  %596 = vmatpush3.bf16.msra.mxu1 %v637_v38 }
  0x22   :  { %575 = vmatprep.subr.bf16.mxu0 %v638_v39  ;;  %597 = vmatprep.subr.bf16.mxu1 %v639_v40 }
  0x25   :  { %576 = vmatpush3.bf16.msra.mxu0 %v640_v41  ;;  %598 = vmatpush3.bf16.msra.mxu1 %v641_v42 }
  0xc8   :  { %v108_v54 = vpop.f32.mrf.mxu0  ;;  %v149_v55 = vpop.f32.mrf.mxu1 }
  0xc9   :  { %v109_v56 = vadd.f32 %v108_v54, %v30_v50  ;;  %v150_v57 = vadd.f32 %v149_v55, %v38_v51 }
  0xca   :  { %v110_v58 = vpop.f32.mrf.mxu0  ;;  %v151_v59 = vpop.f32.mrf.mxu1 }
  0xcb   :  { %v158_v60 = vmax.f32 %v150_v57, 0.0  ;;  %v111_v61 = vadd.f32 %v110_v58, %v34_v52  ;;  %v152_v62 = vadd.f32 %v151_v59, %v42_v53  ;;  %v156_v63 = vmax.f32 %v109_v56, 0.0 }
  0xcc   :  { %v112_v0 = vpop.f32.mrf.mxu0  ;;  %v153_v1 = vpop.f32.mrf.mxu1 }
  0xcd   :  { %v157_v2 = vmax.f32 %v111_v61, 0.0  ;;  %v159_v3 = vmax.f32 %v152_v62, 0.0  ;;  %v162_v4 = vpack.c.bf16 %v158_v60, %v158_v60  ;;  %v160_v9 = vpack.c.bf16 %v156_v63, %v156_v63 }
  0xce   :  { %v113_v5 = vpop.f32.mrf.mxu0  ;;  %v154_v6 = vpop.f32.mrf.mxu1 }
  0xcf   :  { %v161_v7 = vpack.c.bf16 %v157_v2, %v157_v2  ;;  %v163_v8 = vpack.c.bf16 %v159_v3, %v159_v3 }
  0xd1   :  { %459 = vmatprep.mubr.bf16.mxu0 %v161_v7  ;;  %499 = vmatprep.mubr.bf16.mxu1 %v163_v8 }
  0xd2   :  { %460 = vmatmul.mubr.bf16.vlgmr.msra.gmra.mxu0 %v160_v9  ;;  %500 = vmatmul.mubr.bf16.vlgmr.msra.gmra.mxu1 %v162_v4 }
 0x192   :  { %v577_v10 = vpop.f32.mrf.mxu0  ;;  %v599_v11 = vpop.f32.mrf.mxu1 }
 0x194   :  { %v578_v13 = vpop.f32.mrf.mxu0  ;;  %v600_v14 = vpop.f32.mrf.mxu1 }
 0x195   :  { %v579_v15 = vadd.f32 %v578_v13, %v577_v10  ;;  %v601_v19 = vadd.f32 %v600_v14, %v599_v11 }
 0x196   :  { %v580_v16 = vpop.f32.mrf.mxu0  ;;  %v602_v17 = vpop.f32.mrf.mxu1 }
 0x197   :  { %v462_v18 = vadd.f32 %v579_v15, %v527_v12 }
 0x198   :  { %v581_v20 = vpop.f32.mrf.mxu0  ;;  %v603_v21 = vpop.f32.mrf.mxu1 }
 0x199   :  { %v502_v22 = vadd.f32 %v601_v19, %v462_v18 }
 0x19b   :  { %v560_v23 = vmul.f32 -1.442695, %v502_v22 }
 0x19d   :  { %642 = vpow2.f32 %v560_v23 }
 0x1aa   :  { %v643_v24 = vpop.eup %642 }
 0x1ab   :  { %v510_v25 = vadd.f32 1.0, %v643_v24 }
 0x1ad   :  { %644 = vrcp.f32 %v510_v25 }
 0x1ba   :  { %v645_v26 = vpop.eup %644 }
 0x1bb   :  { %v513_v27 = vpack.c.bf16 %v645_v26, %v645_v26 }
 0x1bd   :  { %514 = vst [vmem:[%s796_s5] sm:$0xf] %v513_v27 }

</bundles_post_ra>
